<compile_context>
chip_gen: v7x
topology: tpu7x:2x2x1
jax: 0.10.0
libtpu: 0.0.40
codegen_flags: <defaults>
</compile_context>

<pallas_src>
import jax
import jax.numpy as jnp
from jax.experimental import pallas as pl
from jax.experimental.pallas import tpu as pltpu


def prior_disc_kernel(x_ref, w0_ref, b0_ref, w1_ref, b1_ref, w2_ref, b2_ref,
                      o_ref, acc_ref):
    k = pl.program_id(1)

    # Layer 0, output-column chunk k: h0 = relu(x @ W0[:, chunk] + b0[chunk]).
    # MXU matmul with f32 accumulation; bias/ReLU on the VPU in f32.
    h0 = jnp.dot(x_ref[...], w0_ref[...], preferred_element_type=jnp.float32)
    h0 = jnp.maximum(h0 + b0_ref[...], 0.0)

    # Layer 1 partial sum over the same chunk: acc += h0 @ W1[chunk, :].
    partial = jnp.dot(h0.astype(w1_ref.dtype), w1_ref[...],
                      preferred_element_type=jnp.float32)

    @pl.when(k == 0)
    def _():
        acc_ref[...] = partial

    @pl.when(k > 0)
    def _():
        acc_ref[...] += partial

    # Finalize on the last chunk: bias + ReLU, then the width-1 layer 2 as a
    # VPU multiply + XLU lane reduce (all f32), scalar bias from SMEM, sigmoid.
    @pl.when(k == pl.num_programs(1) - 1)
    def _():
        h1 = jnp.maximum(acc_ref[...] + b1_ref[...], 0.0)
        z = jnp.sum(h1 * w2_ref[...], axis=-1, keepdims=True) + b2_ref[0, 0]
        o_ref[...] = jax.nn.sigmoid(z).astype(o_ref.dtype)


def _round_up(x, m):
    return ((x + m - 1) // m) * m


def _vmem_estimate(tile_b, tk, D, itemsize):
    """Rough per-core VMEM footprint: pipeline buffers + scratch + live temps."""
    n_k = pl.cdiv(D, tk)
    wbuf = 1 if n_k == 1 else 2                 # weight-chunk pipeline depth
    x_b = 2 * tile_b * D * itemsize             # x tile, double-buffered
    w_b = wbuf * (D * tk + tk * D) * itemsize   # W0 column chunk + W1 row chunk
    bias = wbuf * tk * 4 + 2 * D * 4            # b0 chunk + b1 + w2 row (f32)
    out_b = 2 * tile_b * 4                      # output tile
    acc = tile_b * D * 4                        # f32 layer-1 accumulator scratch
    live = tile_b * tk * (4 + itemsize) + tile_b * D * 4   # h0 (+cast) + h1
    return x_b + w_b + bias + out_b + acc + live


def _choose_tiling(B, D, block_b, block_k, itemsize, vmem_cap):
    """Pick (tile_b, tk) fitting the VMEM budget, preferring large tiles."""
    block_b = max(8, (block_b // 8) * 8)
    # Batch-tile candidates (largest first).
    if B <= 8:
        tb0 = B
    else:
        tb0 = min(block_b, _round_up(B, 8))
        if B >= 256:
            # Keep >= 2 batch blocks so the "parallel" axis can shard across
            # v7x's two TensorCores (harmless on single-TC v5e/v6e).
            tb0 = min(tb0, _round_up(pl.cdiv(B, 2), 128))
    tb_cands = [tb0]
    t = tb0
    while t > 128:
        t = max(128, _round_up(t // 2, 128))
        if t not in tb_cands:
            tb_cands.append(t)

    # K-chunk candidates (largest first): full D, then 128-multiples dividing D.
    if block_k is not None and block_k < D and D % block_k == 0:
        tk_cands = [block_k]
    else:
        tk_cands = [D] + [c for c in (2048, 1024, 512, 256, 128)
                          if c < D and D % c == 0]

    for tb in tb_cands:
        for tk in tk_cands:
            if _vmem_estimate(tb, tk, D, itemsize) <= vmem_cap:
                return tb, tk
    return tb_cands[-1], tk_cands[-1]   # nothing fits the estimate; go smallest


def prior_discriminator(x, params, *, block_b=1024, block_k=None,
                        compute_dtype=jnp.bfloat16):
    """sigmoid(relu(relu(x @ W0 + b0) @ W1 + b1) @ w2 + b2) -> [B, 1] float32.

    x: [B, D].  params: w0, w1 [D, D]; b0, b1 [1, D]; w2 [D, 1]; b2 [1, 1]
    (weights stored [in, out], i.e. pre-transposed vs. torch.nn.Linear).
    compute_dtype controls only the MXU operand dtype; accumulation and all
    elementwise math stay f32.
    """
    w0, b0 = params["w0"], params["b0"]
    w1, b1 = params["w1"], params["b1"]
    w2, b2 = params["w2"], params["b2"]
    B, D = x.shape

    cdt = jnp.dtype(compute_dtype if compute_dtype is not None else jnp.float32)
    x_c = x.astype(cdt)
    w0_c = w0.astype(cdt)
    w1_c = w1.astype(cdt)

    # Layer-2 weight as a lane-aligned f32 [1, D] row (VPU/XLU tail, not MXU);
    # biases f32; the single scalar bias b2 goes to SMEM.
    w2_row = w2.reshape(1, D).astype(jnp.float32)
    b0_f = b0.reshape(1, D).astype(jnp.float32)
    b1_f = b1.reshape(1, D).astype(jnp.float32)
    b2_f = b2.reshape(1, 1).astype(jnp.float32)

    # Generation-aware VMEM cap (v5e/v6e: 128 MiB, v7x: 64 MiB per TC).
    try:
        vmem_capacity = int(pltpu.get_tpu_info().vmem_capacity_bytes)
    except Exception:               # query unavailable -> assume smallest (v7x)
        vmem_capacity = 64 << 20
    vmem_cap = max(vmem_capacity - (8 << 20), 16 << 20)

    tile_b, tk = _choose_tiling(B, D, block_b, block_k, cdt.itemsize, vmem_cap)
    n_blocks = pl.cdiv(B, tile_b)
    n_k = pl.cdiv(D, tk)
    b_pad = n_blocks * tile_b
    if b_pad != B:
        x_c = jnp.pad(x_c, ((0, b_pad - B), (0, 0)))

    vmem_limit = int(min(max(_vmem_estimate(tile_b, tk, D, cdt.itemsize)
                             + (4 << 20), 32 << 20), vmem_cap))

    # Single-buffer blocks whose index never changes (saves one pipeline copy).
    def spec(shape, index_map, constant=False):
        if constant:
            return pl.BlockSpec(shape, index_map, pipeline_mode=pl.Buffered(1))
        return pl.BlockSpec(shape, index_map)

    w_const = n_k == 1   # weights fetched once and kept resident

    out = pl.pallas_call(
        prior_disc_kernel,
        out_shape=jax.ShapeDtypeStruct((b_pad, 1), jnp.float32),
        grid=(n_blocks, n_k),
        in_specs=[
            spec((tile_b, D), lambda i, k: (i, 0)),                 # x (pipelined)
            spec((D, tk), lambda i, k: (0, k), constant=w_const),   # W0 col chunk
            spec((1, tk), lambda i, k: (0, k), constant=w_const),   # b0 chunk
            spec((tk, D), lambda i, k: (k, 0), constant=w_const),   # W1 row chunk
            spec((1, D), lambda i, k: (0, 0), constant=True),       # b1
            spec((1, D), lambda i, k: (0, 0), constant=True),       # w2 row
            pl.BlockSpec(memory_space=pltpu.MemorySpace.SMEM),      # b2 scalar
        ],
        out_specs=pl.BlockSpec((tile_b, 1), lambda i, k: (i, 0)),
        scratch_shapes=[pltpu.VMEM((tile_b, D), jnp.float32)],
        compiler_params=pltpu.CompilerParams(
            dimension_semantics=("parallel", "arbitrary"),
            vmem_limit_bytes=vmem_limit,
        ),
    )(x_c, w0_c, b0_f, w1_c, b1_f, w2_row, b2_f)
    return out[:B]


def init_params(key, input_dim):
    """Deterministic init mimicking nn.Linear shapes (weights kept [in, out])."""
    ks = jax.random.split(key, 6)
    scale = 1.0 / jnp.sqrt(input_dim)
    w0 = jax.random.uniform(ks[0], (input_dim, input_dim), jnp.float32, -scale, scale)
    b0 = jax.random.uniform(ks[1], (1, input_dim), jnp.float32, -scale, scale)
    w1 = jax.random.uniform(ks[2], (input_dim, input_dim), jnp.float32, -scale, scale)
    b1 = jax.random.uniform(ks[3], (1, input_dim), jnp.float32, -scale, scale)
    w2 = jax.random.uniform(ks[4], (input_dim, 1), jnp.float32, -scale, scale)
    b2 = jax.random.uniform(ks[5], (1, 1), jnp.float32, -scale, scale)
    return dict(w0=w0, b0=b0, w1=w1, b1=b1, w2=w2, b2=b2)


def reference(x, p):
    h = jnp.maximum(jnp.dot(x, p["w0"], precision="highest") + p["b0"], 0.0)
    h = jnp.maximum(jnp.dot(h, p["w1"], precision="highest") + p["b1"], 0.0)
    # Final [D,1] layer as an explicit f32 weighted sum (same as the kernel's
    # VPU/XLU tail), so the check is independent of matmul precision.
    z = jnp.sum(h * p["w2"].reshape(1, -1), axis=-1, keepdims=True) + p["b2"]
    return jax.nn.sigmoid(z)


if __name__ == "__main__":
    key = jax.random.PRNGKey(0)
    k_x, k_p, k_x2 = jax.random.split(key, 3)

    # Small demo shapes (module implies x: [batch, input_dim]).
    batch, input_dim = 8, 32
    x = jax.random.normal(k_x, (batch, input_dim), jnp.float32)
    params = init_params(k_p, input_dim)
    ref = reference(x, params)

    # Exact (f32 MXU) path.
    out = jax.block_until_ready(
        prior_discriminator(x, params, compute_dtype=jnp.float32))
    assert out.shape == (batch, 1), out.shape
    assert jnp.allclose(out, ref, atol=1e-4, rtol=1e-4), "mismatch (small, f32)"

    # Default bf16 MXU path (looser tolerance: operands quantized to bf16).
    out_bf = jax.block_until_ready(prior_discriminator(x, params))
    assert jnp.allclose(out_bf, ref, atol=2e-2, rtol=2e-2), "mismatch (small, bf16)"

    # Batch grid + padding path: 3 grid steps, non-divisible B.
    batch2, dim2 = 260, 128
    x2 = jax.random.normal(k_x2, (batch2, dim2), jnp.float32)
    params2 = init_params(jax.random.fold_in(k_p, 1), dim2)
    ref2 = reference(x2, params2)
    out2 = jax.block_until_ready(
        prior_discriminator(x2, params2, block_b=128, compute_dtype=jnp.float32))
    assert out2.shape == (batch2, 1), out2.shape
    assert jnp.allclose(out2, ref2, atol=1e-4, rtol=1e-4), "mismatch (gridded, f32)"

    out3 = jax.block_until_ready(prior_discriminator(x2, params2, block_b=128))
    assert jnp.allclose(out3, ref2, atol=2e-2, rtol=2e-2), "mismatch (gridded, bf16)"

    # Exercise the K-chunked reduction path explicitly (2 chunks over D).
    batch3, dim3 = 64, 256
    x3 = jax.random.normal(jax.random.fold_in(k_x2, 2), (batch3, dim3), jnp.float32)
    params3 = init_params(jax.random.fold_in(k_p, 2), dim3)
    ref3 = reference(x3, params3)
    out4 = jax.block_until_ready(
        prior_discriminator(x3, params3, block_b=64, block_k=128,
                            compute_dtype=jnp.float32))
    assert out4.shape == (batch3, 1), out4.shape
    assert jnp.allclose(out4, ref3, atol=1e-4, rtol=1e-4), "mismatch (k-chunked)"

    print("KERNEL_OK")
</pallas_src>

<mosaic_0001>
module attributes {stable_mosaic.version = 11 : i64} {
  func.func @prior_disc_kernel(%arg0: i32, %arg1: i32, %arg2: memref<8x32xf32, #tpu.memory_space<vmem>>, %arg3: memref<32x32xf32, #tpu.memory_space<vmem>>, %arg4: memref<1x32xf32, #tpu.memory_space<vmem>>, %arg5: memref<32x32xf32, #tpu.memory_space<vmem>>, %arg6: memref<1x32xf32, #tpu.memory_space<vmem>>, %arg7: memref<1x32xf32, #tpu.memory_space<vmem>>, %arg8: memref<1x1xf32, #tpu.memory_space<smem>>, %arg9: memref<8x1xf32, #tpu.memory_space<vmem>>, %arg10: memref<8x32xf32, #tpu.memory_space<vmem>>) attributes {dimension_semantics = [#tpu.dimension_semantics<parallel>, #tpu.dimension_semantics<arbitrary>], iteration_bounds = array<i64: 1, 1>, scalar_prefetch = 0 : i64, scratch_operands = 1 : i64, tpu.core_type = #tpu.core_type<tc>, window_params = [{transform_indices = @transform_0, window_bounds = array<i64: 8, 32>}, {pipeline_mode = #tpu.pipeline_mode<synchronous>, transform_indices = @transform_1, window_bounds = array<i64: 32, 32>}, {pipeline_mode = #tpu.pipeline_mode<synchronous>, transform_indices = @transform_2, window_bounds = array<i64: 1, 32>}, {pipeline_mode = #tpu.pipeline_mode<synchronous>, transform_indices = @transform_3, window_bounds = array<i64: 32, 32>}, {pipeline_mode = #tpu.pipeline_mode<synchronous>, transform_indices = @transform_4, window_bounds = array<i64: 1, 32>}, {pipeline_mode = #tpu.pipeline_mode<synchronous>, transform_indices = @transform_5, window_bounds = array<i64: 1, 32>}, {transform_indices = @transform_6, window_bounds = array<i64: 1, 1>}, {transform_indices = @transform_7, window_bounds = array<i64: 8, 1>}]} {
    %c0 = arith.constant 0 : index
    %c0_0 = arith.constant 0 : index
    %0 = vector.load %arg2[%c0, %c0_0] : memref<8x32xf32, #tpu.memory_space<vmem>>, vector<8x32xf32>
    %c0_1 = arith.constant 0 : index
    %c0_2 = arith.constant 0 : index
    %1 = vector.load %arg3[%c0_1, %c0_2] : memref<32x32xf32, #tpu.memory_space<vmem>>, vector<32x32xf32>
    %cst = arith.constant dense<0.000000e+00> : vector<8x32xf32>
    %2 = tpu.matmul %0, %1, %cst {dimension_numbers = #tpu.dot_dimension_numbers<[1], [0], [0], [1], [0, 0, 1, 1], [], []>} : vector<8x32xf32>, vector<32x32xf32>, vector<8x32xf32> -> vector<8x32xf32>
    %c0_3 = arith.constant 0 : index
    %c0_4 = arith.constant 0 : index
    %3 = vector.load %arg4[%c0_3, %c0_4] : memref<1x32xf32, #tpu.memory_space<vmem>>, vector<1x32xf32>
    %4 = vector.broadcast %3 : vector<1x32xf32> to vector<8x32xf32>
    %5 = arith.addf %2, %4 : vector<8x32xf32>
    %cst_5 = arith.constant 0.000000e+00 : f32
    %6 = vector.broadcast %cst_5 : f32 to vector<8x32xf32>
    %7 = arith.maximumf %5, %6 : vector<8x32xf32>
    %c0_6 = arith.constant 0 : index
    %c0_7 = arith.constant 0 : index
    %8 = vector.load %arg5[%c0_6, %c0_7] : memref<32x32xf32, #tpu.memory_space<vmem>>, vector<32x32xf32>
    %cst_8 = arith.constant dense<0.000000e+00> : vector<8x32xf32>
    %9 = tpu.matmul %7, %8, %cst_8 {dimension_numbers = #tpu.dot_dimension_numbers<[1], [0], [0], [1], [0, 0, 1, 1], [], []>} : vector<8x32xf32>, vector<32x32xf32>, vector<8x32xf32> -> vector<8x32xf32>
    %c0_i32 = arith.constant 0 : i32
    %10 = arith.cmpi eq, %arg1, %c0_i32 : i32
    %11 = arith.extui %10 : i1 to i32
    %c0_i32_9 = arith.constant 0 : i32
    %12 = arith.cmpi ne, %11, %c0_i32_9 : i32
    scf.if %12 {
      %c0_14 = arith.constant 0 : index
      %c0_15 = arith.constant 0 : index
      %19 = vector.load %arg10[%c0_14, %c0_15] : memref<8x32xf32, #tpu.memory_space<vmem>>, vector<8x32xf32>
      tpu.vector_store %arg10[%c0_14, %c0_15], %9 {strides = array<i32>} : memref<8x32xf32, #tpu.memory_space<vmem>>, vector<8x32xf32>,
    } else {
    }
    %c0_i32_10 = arith.constant 0 : i32
    %13 = arith.cmpi sgt, %arg1, %c0_i32_10 : i32
    %14 = arith.extui %13 : i1 to i32
    %c0_i32_11 = arith.constant 0 : i32
    %15 = arith.cmpi ne, %14, %c0_i32_11 : i32
    scf.if %15 {
      %c0_14 = arith.constant 0 : index
      %c0_15 = arith.constant 0 : index
      %19 = vector.load %arg10[%c0_14, %c0_15] : memref<8x32xf32, #tpu.memory_space<vmem>>, vector<8x32xf32>
      %20 = arith.addf %19, %9 : vector<8x32xf32>
      %c0_16 = arith.constant 0 : index
      %c0_17 = arith.constant 0 : index
      %21 = vector.load %arg10[%c0_16, %c0_17] : memref<8x32xf32, #tpu.memory_space<vmem>>, vector<8x32xf32>
      tpu.vector_store %arg10[%c0_16, %c0_17], %20 {strides = array<i32>} : memref<8x32xf32, #tpu.memory_space<vmem>>, vector<8x32xf32>,
    } else {
    }
    %c0_i32_12 = arith.constant 0 : i32
    %16 = arith.cmpi eq, %arg1, %c0_i32_12 : i32
    %17 = arith.extui %16 : i1 to i32
    %c0_i32_13 = arith.constant 0 : i32
    %18 = arith.cmpi ne, %17, %c0_i32_13 : i32
    scf.if %18 {
      %c0_14 = arith.constant 0 : index
      %c0_15 = arith.constant 0 : index
      %19 = vector.load %arg10[%c0_14, %c0_15] : memref<8x32xf32, #tpu.memory_space<vmem>>, vector<8x32xf32>
      %c0_16 = arith.constant 0 : index
      %c0_17 = arith.constant 0 : index
      %20 = vector.load %arg6[%c0_16, %c0_17] : memref<1x32xf32, #tpu.memory_space<vmem>>, vector<1x32xf32>
      %21 = vector.broadcast %20 : vector<1x32xf32> to vector<8x32xf32>
      %22 = arith.addf %19, %21 : vector<8x32xf32>
      %cst_18 = arith.constant 0.000000e+00 : f32
      %23 = vector.broadcast %cst_18 : f32 to vector<8x32xf32>
      %24 = arith.maximumf %22, %23 : vector<8x32xf32>
      %c0_19 = arith.constant 0 : index
      %c0_20 = arith.constant 0 : index
      %25 = vector.load %arg7[%c0_19, %c0_20] : memref<1x32xf32, #tpu.memory_space<vmem>>, vector<1x32xf32>
      %26 = vector.broadcast %25 : vector<1x32xf32> to vector<8x32xf32>
      %27 = arith.mulf %24, %26 : vector<8x32xf32>
      %cst_21 = arith.constant dense<0.000000e+00> : vector<8xf32>
      %28 = vector.multi_reduction <add>, %27, %cst_21 [1] : vector<8x32xf32> to vector<8xf32>
      %29 = vector.shape_cast %28 : vector<8xf32> to vector<8x1xf32>
      %c0_22 = arith.constant 0 : index
      %c0_23 = arith.constant 0 : index
      %30 = memref.load %arg8[%c0_22, %c0_23] : memref<1x1xf32, #tpu.memory_space<smem>>
      %31 = vector.broadcast %30 : f32 to vector<8x1xf32>
      %32 = arith.addf %29, %31 : vector<8x1xf32>
      %33 = arith.negf %32 : vector<8x1xf32>
      %34 = math.exp %33 : vector<8x1xf32>
      %cst_24 = arith.constant 1.000000e+00 : f32
      %35 = vector.broadcast %cst_24 : f32 to vector<8x1xf32>
      %36 = arith.addf %35, %34 : vector<8x1xf32>
      %37 = arith.divf %35, %36 : vector<8x1xf32>
      %c0_25 = arith.constant 0 : index
      %c0_26 = arith.constant 0 : index
      %38 = vector.load %arg9[%c0_25, %c0_26] : memref<8x1xf32, #tpu.memory_space<vmem>>, vector<8x1xf32>
      tpu.vector_store %arg9[%c0_25, %c0_26], %37 {strides = array<i32>} : memref<8x1xf32, #tpu.memory_space<vmem>>, vector<8x1xf32>,
    } else {
    }
    return
  }
  func.func @transform_0(%arg0: i32, %arg1: i32) -> (i32, i32) {
    %c0_i32 = arith.constant 0 : i32
    %c0_i32_0 = arith.constant 0 : i32
    return %arg0, %c0_i32 : i32, i32
  }
  func.func @transform_1(%arg0: i32, %arg1: i32) -> (i32, i32) {
    %c0_i32 = arith.constant 0 : i32
    %c0_i32_0 = arith.constant 0 : i32
    return %c0_i32, %arg1 : i32, i32
  }
  func.func @transform_2(%arg0: i32, %arg1: i32) -> (i32, i32) {
    %c0_i32 = arith.constant 0 : i32
    %c0_i32_0 = arith.constant 0 : i32
    return %c0_i32, %arg1 : i32, i32
  }
  func.func @transform_3(%arg0: i32, %arg1: i32) -> (i32, i32) {
    %c0_i32 = arith.constant 0 : i32
    %c0_i32_0 = arith.constant 0 : i32
    return %arg1, %c0_i32 : i32, i32
  }
  func.func @transform_4(%arg0: i32, %arg1: i32) -> (i32, i32) {
    %c0_i32 = arith.constant 0 : i32
    %c0_i32_0 = arith.constant 0 : i32
    %c0_i32_1 = arith.constant 0 : i32
    return %c0_i32, %c0_i32_0 : i32, i32
  }
  func.func @transform_5(%arg0: i32, %arg1: i32) -> (i32, i32) {
    %c0_i32 = arith.constant 0 : i32
    %c0_i32_0 = arith.constant 0 : i32
    %c0_i32_1 = arith.constant 0 : i32
    return %c0_i32, %c0_i32_0 : i32, i32
  }
  func.func @transform_6(%arg0: i32, %arg1: i32) -> (i32, i32) {
    %c0_i32 = arith.constant 0 : i32
    %c0_i32_0 = arith.constant 0 : i32
    %c0_i32_1 = arith.constant 0 : i32
    return %c0_i32, %c0_i32_0 : i32, i32
  }
  func.func @transform_7(%arg0: i32, %arg1: i32) -> (i32, i32) {
    %c0_i32 = arith.constant 0 : i32
    %c0_i32_0 = arith.constant 0 : i32
    return %arg0, %c0_i32 : i32, i32
  }
}

</mosaic_0001>

<bundles_post_ra>
// kernel: tpu_custom_call.1
= control target key start
LH: loop header
LB: loop body
LE: loop exit
PB: predicated region body
PF: predicated region fallthrough
CT: control target
= control target key end

     0   :  { %13 = vsyncpa [#allocation5], 0  ;;  %s524_s0 = inlined_call_operand.hbm [shape: f32[8,32], index: 0, kind: input, shape index: {}]   ;;  %s525_s1 = inlined_call_operand.hbm [shape: f32[32,32], index: 1, kind: input, shape index: {}]   ;;  %s526_s2 = inlined_call_operand.vmem [shape: f32[1,32], index: 2, kind: input, shape index: {}]   ;;  %s527_s3 = inlined_call_operand.hbm [shape: f32[32,32], index: 3, kind: input, shape index: {}]   ;;  %s528_s4 = inlined_call_operand.vmem [shape: f32[1,32], index: 4, kind: input, shape index: {}]   ;;  %s529_s5 = inlined_call_operand.vmem [shape: f32[1,32], index: 5, kind: input, shape index: {}]   ;;  %s530_s6 = inlined_call_operand.<no memory space> [shape: f32[1,1], index: 6, kind: input, shape index: {}]   ;;  %s531_s7 = inlined_call_operand.vmem [shape: f32[8,1], index: 7, kind: output, shape index: {}]  }
   0x1   :  { %14 = vsyncpa [#allocation7], 0  ;;  %s415_s24 = smov [#allocation6]   ;;  %s345_s28 = scalar_lea.hbm %s525_s1, 512 }
   0x2   :  { %s30_s25 = sshll.u32 %s415_s24, 4  ;;  %p346_p0 = scmp.ne.s32.totalorder %s525_s1, %s345_s28  ;;  %s31_s25 = int_to_ptr.vmem [resolvable:$true] %s30_s25 }
   0x3   :  { %p349_p1 = scmp.lt.u32.totalorder %s345_s28, %s525_s1 }
   0x5   :  { %p351_p2 = pnand %p349_p1, %p346_p0 }
   0x7   :  { %354 = shalt.err (!%p351_p2)
}
   0x8   :  { %s355_s10 = scalar_lea.vmem %s31_s25, 512  ;;  %p360_p4 = scmp.lt.s32.totalorder %s31_s25, %s31_s25 }
   0x9   :  { %p356_p3 = scmp.ne.s32.totalorder %s31_s25, %s355_s10  ;;  %p361_p5 = scmp.lt.s32.totalorder %s355_s10, %s355_s10 }
   0xb   :  { %p362_p6 = por %p361_p5, %p360_p4 }
   0xd   :  { %p363_p7 = pnand %p362_p6, %p356_p3 }
   0xf   :  { %366 = shalt.err (!%p363_p7)
}
  0x10   :  { %s416_s11 = smov 128   ;;  %s417_s12 = smov 8  }
  0x11   :  { %36 = dma.hbm_to_vmem [thread:$0]  %s525_s1, 512, %s31_s25, [#allocation7], %s416_s11, %s416_s11, %s417_s12  }
  0x12   :  { %s418_s15 = smov [#allocation4]   ;;  %s419_s17 = smov [#allocation8]  }
  0x13   :  { %s21_s16 = sshll.u32 %s418_s15, 4  ;;  %s44_s18 = sshll.u32 %s419_s17, 4  ;;  %s22_s16 = int_to_ptr.vmem [resolvable:$true] %s21_s16  ;;  %s45_s18 = int_to_ptr.vmem [resolvable:$true] %s44_s18 }
  0x14   :  { %s367_s21 = scalar_lea.hbm %s524_s0, 128 }
  0x15   :  { %p368_p8 = scmp.ne.s32.totalorder %s524_s0, %s367_s21  ;;  %p371_p9 = scmp.lt.u32.totalorder %s367_s21, %s524_s0 }
  0x17   :  { %p373_p10 = pnand %p371_p9, %p368_p8 }
  0x19   :  { %376 = shalt.err (!%p373_p10)
}
  0x1a   :  { %s377_s1 = scalar_lea.vmem %s22_s16, 128  ;;  %p382_p12 = scmp.lt.s32.totalorder %s22_s16, %s22_s16 }
  0x1b   :  { %p378_p11 = scmp.ne.s32.totalorder %s22_s16, %s377_s1  ;;  %p383_p13 = scmp.lt.s32.totalorder %s377_s1, %s377_s1 }
  0x1d   :  { %p384_p0 = por %p383_p13, %p382_p12 }
  0x1f   :  { %p385_p1 = pnand %p384_p0, %p378_p11 }
  0x21   :  { %388 = shalt.err (!%p385_p1)
}
  0x22   :  { %24 = dma.hbm_to_vmem [thread:$0]  %s524_s0, 128, %s22_s16, [#allocation5]  }
  0x23   :  { %s389_s30 = scalar_lea.hbm %s527_s3, 512 }
  0x24   :  { %p390_p2 = scmp.ne.s32.totalorder %s527_s3, %s389_s30  ;;  %p393_p3 = scmp.lt.u32.totalorder %s389_s30, %s527_s3 }
  0x26   :  { %p395_p4 = pnand %p393_p3, %p390_p2 }
  0x28   :  { %398 = shalt.err (!%p395_p4)
}
  0x29   :  { %s399_s14 = scalar_lea.vmem %s45_s18, 512  ;;  %p404_p6 = scmp.lt.s32.totalorder %s45_s18, %s45_s18 }
  0x2a   :  { %p400_p5 = scmp.ne.s32.totalorder %s45_s18, %s399_s14  ;;  %p405_p7 = scmp.lt.s32.totalorder %s399_s14, %s399_s14 }
  0x2c   :  { %p406_p8 = por %p405_p7, %p404_p6 }
  0x2e   :  { %p407_p9 = pnand %p406_p8, %p400_p5 }
  0x30   :  { %410 = shalt.err (!%p407_p9)
}
  0x31   :  { %50 = dma.hbm_to_vmem [thread:$0]  %s527_s3, 512, %s45_s18, [#allocation7], %s416_s11, %s416_s11, %s417_s12  }
  0x32   :  { %411 = dma.done.wait [#allocation5], 128  }
  0x33   :  { %412 = vsyncadd [#allocation5], 4294967168 }
  0x34   :  { %413 = dma.done.wait [#allocation7], 1024  }
  0x35   :  { %414 = vsyncadd [#allocation7], 4294966272  ;;  %v420_v0 = vmov 0.0|0.0   ;;  %vm421_vm0 = vmmov 0   ;;  %v422_v1 = vmov 0.0   ;;  %v67_v2 = vld [vmem:[#allocation6] sm:$0xff]  ;;  %v267_v29 = vstv %s530_s6 }
  0x36   :  { %321 = vmatprep.subr.bf16.mxu0 %v420_v0  ;;  %307 = vmatprep.mubr.msk.f32.mxu0 %vm421_vm0, %v422_v1  ;;  %v68_v3 = vld [vmem:[#allocation6 + $0x8] sm:$0xff]  ;;  %v69_v4 = vld [vmem:[#allocation6 + $0x10] sm:$0xff]  ;;  %v70_v6 = vld [vmem:[#allocation6 + $0x18] sm:$0xff]  ;;  %vm78_vm1 = vcmask 261120   ;;  %vm275_vm2 = vcmask 7168  }
  0x37   :  { %327 = vmatprep.subr.bf16.mxu1 %v420_v0  ;;  %318 = vmatprep.mubr.msk.f32.mxu1 %vm421_vm0, %v422_v1  ;;  %v322_v5 = vpack.c.bf16 %v68_v3, %v67_v2  ;;  %v153_v7 = vld [vmem:[#allocation8] sm:$0xff]  ;;  %v154_v8 = vld [vmem:[#allocation8 + $0x8] sm:$0xff]  ;;  %v325_v9 = vpack.c.bf16 %v70_v6, %v69_v4  ;;  %v66_v11 = vld [vmem:[#allocation4] sm:$0xff] }
  0x38   :  { %v328_v10 = vpack.c.bf16 %v154_v8, %v153_v7  ;;  %v155_v12 = vld [vmem:[#allocation8 + $0x10] sm:$0xff]  ;;  %v156_v13 = vld [vmem:[#allocation8 + $0x18] sm:$0xff] }
  0x39   :  { %323 = vmatpush3.bf16.msra.mxu0 %v322_v5  ;;  %v331_v14 = vpack.c.bf16 %v156_v13, %v155_v12  ;;  %v283_v15 = vld [vmem:[%s526_s2] ss:$0 sm:$0xff] }
  0x3a   :  { %324 = vmatprep.subr.bf16.mxu0 %v420_v0  ;;  %329 = vmatpush3.bf16.msra.mxu1 %v328_v10  ;;  %v286_v22 = vld [vmem:[%s528_s4] ss:$0 sm:$0xff] }
  0x3b   :  { %330 = vmatprep.subr.bf16.mxu1 %v420_v0  ;;  %v287_v25 = vld [vmem:[%s529_s5] ss:$0 sm:$0xff] }
  0x3d   :  { %326 = vmatpush3.bf16.msra.mxu0 %v325_v9 }
  0x3e   :  { %332 = vmatpush3.bf16.msra.mxu1 %v331_v14 }
  0x40   :  { %308 = vmatmul.mubr.msk.f32.vlgmr.msra.gmra.mrb[0].mxu0 %vm78_vm1, %v66_v11 }
 0x113   :  { %v148_v16 = vpop.f32.mrb[0].mxu0 }
 0x114   :  { %v149_v17 = vadd.f32 %v283_v15, %v148_v16  ;;  %v309_v18 = vpop.f32.mrb[1].mxu0 }
 0x116   :  { %v152_v19 = vmax.f32 %v149_v17, 0.0 }
 0x118   :  { %319 = vmatmul.mubr.msk.f32.vlgmr.msra.gmra.mrb[0].mxu1 %vm78_vm1, %v152_v19 }
 0x1eb   :  { %v226_v20 = vpop.f32.mrb[0].mxu1 }
 0x1ec   :  { %234 = vst.msk [vmem:[#allocation2] sm:$0xff] %vm78_vm1, %v226_v20  ;;  %v320_v21 = vpop.f32.mrb[1].mxu1 }
 0x1f3   :  { %v245_v23 = vld [vmem:[#allocation2] sm:$0xff] }
 0x1f4   :  { %v253_v24 = vadd.f32 %v286_v22, %v245_v23 }
 0x1f6   :  { %v254_v26 = vmax.f32 %v253_v24, 0.0 }
 0x1f8   :  { %v262_v27 = vmul.f32 %v287_v25, %v254_v26 }
 0x1fa   :  { %v263_v28 = vsel %vm78_vm1, %v262_v27, 0.0 }
 0x1fb   :  { %264 = vadd.xlane.f32.xlu0 %v263_v28 }
 0x288   :  { %v265_v30 = vpop.xlane.xlu0 %264 }
 0x289   :  { %v268_v31 = vadd.f32 %v267_v29, %v265_v30 }
 0x28b   :  { %v288_v32 = vmul.f32 -1.442695, %v268_v31 }
 0x28d   :  { %341 = vpow2.f32 %v288_v32 }
 0x297   :  { %v342_v33 = vpop.eup %341 }
 0x298   :  { %v272_v34 = vadd.f32 1.0, %v342_v33 }
 0x29a   :  { %343 = vrcp.f32 %v272_v34 }
 0x2a4   :  { %v344_v35 = vpop.eup %343 }
 0x2a5   :  { %276 = vst.msk [vmem:[%s531_s7] sm:$0xff] %vm275_vm2, %v344_v35 }
 0x2a6   :  { %281 = vsyncpa [#allocation5], 1 }
 0x2a7   :  { %282 = vsyncpa [#allocation7], 1 }

</bundles_post_ra>
